<compile_context>
chip_gen: v7x
topology: tpu7x:2x2x1
jax: 0.10.0
libtpu: 0.0.40
codegen_flags: <defaults>
</compile_context>

<pallas_src>
import jax
import jax.numpy as jnp
from jax import lax
from jax.experimental import pallas as pl
from jax.experimental.pallas import tpu as pltpu


def _round_up(x, m):
    return ((x + m - 1) // m) * m


def _cdiv(a, b):
    return -(-a // b)


# -----------------------------------------------------------------------------
# Kernels
# -----------------------------------------------------------------------------
def _gemm_bias_lrelu_kernel(a_ref, w_ref, b_ref, o_ref):
    """Resident-weight path (single K block, grid = (m_tiles,)).

    a_ref: (tile_m, K)       bf16  im2col patch block
    w_ref: (K, OC_pad)       bf16  full weight matrix (constant block index ->
                                   DMA'd once for the whole grid)
    b_ref: (1, OC_pad)       f32   bias (constant block index)
    o_ref: (tile_m, OC_pad)  out   lane-dense, unmasked store
    """
    y = jnp.dot(a_ref[...], w_ref[...], preferred_element_type=jnp.float32)
    y = y + b_ref[...]
    # LeakyReLU(0.2): one VPU vmax instead of compare+select.
    o_ref[...] = jnp.maximum(y, 0.2 * y).astype(o_ref.dtype)


def _gemm_bias_lrelu_ksplit_kernel(a_ref, w_ref, b_ref, o_ref):
    """K-split path (grid = (m_tiles, k_tiles), k innermost / "arbitrary").

    Accumulates directly into the f32 output block: its (i, 0) block index is
    constant across k, so it stays VMEM-resident -- no accumulator scratch.
    """
    k = pl.program_id(1)

    @pl.when(k == 0)
    def _init():
        o_ref[...] = jnp.zeros_like(o_ref)

    o_ref[...] += jnp.dot(a_ref[...], w_ref[...],
                          preferred_element_type=jnp.float32)

    @pl.when(k == pl.num_programs(1) - 1)
    def _finalize():
        y = o_ref[...] + b_ref[...]
        o_ref[...] = jnp.maximum(y, 0.2 * y)


# -----------------------------------------------------------------------------
# Wrapper
# -----------------------------------------------------------------------------
def conv2d_layer_forward(x, weight, bias, *, stride=1, padding=0, dilation=1,
                         tile_m=1024, max_tile_k=1024,
                         weight_resident_bytes=8 * 1024 * 1024,
                         out_dtype=jnp.float32):
    """Conv2dLayer.forward with defaults (ZeroPad2d + Conv2d + LeakyReLU(0.2)).

    x:      (N, C, H, W)    float32 (NCHW, PyTorch convention)
    weight: (OC, C, KH, KW) float32 (PyTorch OIHW layout)
    bias:   (OC,)           float32
    returns (N, OC, OH, OW) out_dtype
    """
    N, C, H, W = x.shape
    OC, _, KH, KW = weight.shape
    p = padding

    # --- NHWC internal layout; cast to bf16 BEFORE any data movement so the
    # boundary transpose and the im2col intermediate move 2-byte elements. ---
    x_nhwc = jnp.transpose(x.astype(jnp.bfloat16), (0, 2, 3, 1))
    x_pad = jnp.pad(x_nhwc, ((0, 0), (p, p), (p, p), (0, 0)))
    Hp, Wp = H + 2 * p, W + 2 * p
    OH = (Hp - dilation * (KH - 1) - 1) // stride + 1
    OW = (Wp - dilation * (KW - 1) - 1) // stride + 1

    # im2col in NHWC (bf16): concat shifted strided views along channels
    # -> (M, K) with K in the same (kh, kw, c) order as the weight matrix.
    cols = []
    for kh in range(KH):
        for kw in range(KW):
            h0 = kh * dilation
            w0 = kw * dilation
            cols.append(x_pad[:, h0:h0 + stride * (OH - 1) + 1:stride,
                                 w0:w0 + stride * (OW - 1) + 1:stride, :])
    A = jnp.concatenate(cols, axis=-1).reshape(N * OH * OW, KH * KW * C)

    # Weight -> (K, OC) in the matching (kh, kw, c) contraction order, bf16.
    Wmat = jnp.transpose(weight.astype(jnp.bfloat16), (2, 3, 1, 0)
                         ).reshape(KH * KW * C, OC)

    M, K = A.shape

    # Lane-dense output: OC padded to a multiple of 128 so every store is an
    # unmasked full-lane vst (128 is already the native v5e MXU width).
    OC_pad = max(128, _round_up(OC, 128))

    # --- M tiling ("parallel" axis).  Multiple of 16 (bf16 packs (16,128) per
    # vreg) and capped so the parallel axis has >= 2 blocks for the two v7x
    # TensorCores.
    M16 = _round_up(M, 16)
    tile_m = _round_up(min(tile_m, M16), 16)
    if M16 >= 32:
        tile_m = min(tile_m, _round_up(_cdiv(M16, 2), 16))
    M_pad = _round_up(M, tile_m)
    m_tiles = M_pad // tile_m

    # --- K tiling.  Keep the whole (K, OC_pad) bf16 weight VMEM-resident when
    # it fits the budget (constant block index -> single HBM fetch, no
    # per-M-tile weight re-read).  Otherwise split K with minimal 128-aligned
    # padding (no gross round-up to a large tile_k).
    w_bytes = K * OC_pad * 2
    if w_bytes <= weight_resident_bytes:
        k_tiles = 1
        tile_k = K                    # block == full dim, no K padding at all
        K_pad = K
    else:
        K128 = _round_up(K, 128)
        k_tiles = _cdiv(K128, max_tile_k)
        tile_k = _round_up(_cdiv(K128, k_tiles), 128)
        K_pad = tile_k * k_tiles

    # Zero-padding only when actually needed (no-ops for the demo shapes).
    if M_pad != M or K_pad != K:
        A = jnp.pad(A, ((0, M_pad - M), (0, K_pad - K)))
    if K_pad != K or OC_pad != OC:
        Wmat = jnp.pad(Wmat, ((0, K_pad - K), (0, OC_pad - OC)))
    bias2d = jnp.pad(bias.astype(jnp.float32).reshape(1, OC),
                     ((0, 0), (0, OC_pad - OC)))

    # VMEM working-set estimate -> explicit limit, clamped to 64 MiB so the
    # same tiling is safe on v7x (64 MiB physical) as well as v5e/v6e.
    est = (2 * tile_m * tile_k * 2        # A (double-buffered, bf16)
           + 2 * tile_k * OC_pad * 2      # W (bf16)
           + 2 * OC_pad * 4               # bias
           + 2 * tile_m * OC_pad * 4)     # output block (f32)
    vmem_limit = int(min(64 * 1024 * 1024, max(32 * 1024 * 1024, 2 * est)))

    if k_tiles == 1:
        kernel = _gemm_bias_lrelu_kernel
        grid = (m_tiles,)
        in_specs = [
            pl.BlockSpec((tile_m, tile_k), lambda i: (i, 0)),   # A tile
            pl.BlockSpec((tile_k, OC_pad), lambda i: (0, 0)),   # W (resident)
            pl.BlockSpec((1, OC_pad), lambda i: (0, 0)),        # bias
        ]
        out_specs = pl.BlockSpec((tile_m, OC_pad), lambda i: (i, 0))
        dims = ("parallel",)
        kernel_out_dtype = out_dtype
    else:
        kernel = _gemm_bias_lrelu_ksplit_kernel
        grid = (m_tiles, k_tiles)
        in_specs = [
            pl.BlockSpec((tile_m, tile_k), lambda i, k: (i, k)),
            pl.BlockSpec((tile_k, OC_pad), lambda i, k: (k, 0)),
            pl.BlockSpec((1, OC_pad), lambda i, k: (0, 0)),
        ]
        out_specs = pl.BlockSpec((tile_m, OC_pad), lambda i, k: (i, 0))
        dims = ("parallel", "arbitrary")
        kernel_out_dtype = jnp.float32   # in-place f32 accumulation in o_ref

    out = pl.pallas_call(
        kernel,
        out_shape=jax.ShapeDtypeStruct((M_pad, OC_pad), kernel_out_dtype),
        grid_spec=pltpu.PrefetchScalarGridSpec(
            num_scalar_prefetch=0,
            grid=grid,
            in_specs=in_specs,
            out_specs=out_specs,
        ),
        compiler_params=pltpu.CompilerParams(
            dimension_semantics=dims,
            vmem_limit_bytes=vmem_limit,
        ),
    )(A, Wmat, bias2d)

    out = out[:M, :OC].astype(out_dtype).reshape(N, OH, OW, OC)
    # Module semantics are NCHW; NHWC consumers should skip this transpose
    # (and pass out_dtype=bf16) to avoid the extra HBM pass.
    return jnp.transpose(out, (0, 3, 1, 2))


if __name__ == "__main__":
    # Shapes consistent with Conv2dLayer(4, 8, 3, stride=1, padding=1).
    N, C, H, W = 2, 4, 16, 16
    OC, KH, KW = 8, 3, 3
    stride, padding, dilation = 1, 1, 1

    key = jax.random.PRNGKey(0)
    kx, kw, kb = jax.random.split(key, 3)
    x = jax.random.normal(kx, (N, C, H, W), dtype=jnp.float32)
    weight = jax.random.normal(kw, (OC, C, KH, KW), dtype=jnp.float32) * 0.1
    bias = jax.random.normal(kb, (OC,), dtype=jnp.float32) * 0.1

    # M = 2*16*16 = 512 -> tile_m auto-caps at 256 (>=2 parallel blocks).
    y = conv2d_layer_forward(x, weight, bias,
                             stride=stride, padding=padding, dilation=dilation)
    y = jax.block_until_ready(y)

    # Pure-JAX f32 reference (conv + bias + LeakyReLU(0.2)).
    ref = lax.conv_general_dilated(
        x, weight, window_strides=(stride, stride),
        padding=[(padding, padding), (padding, padding)],
        rhs_dilation=(dilation, dilation),
        dimension_numbers=("NCHW", "OIHW", "NCHW"))
    ref = ref + bias.reshape(1, OC, 1, 1)
    ref = jnp.where(ref >= 0, ref, 0.2 * ref)

    assert y.shape == ref.shape
    # bf16 MXU operands (f32 accumulate) -> relaxed tolerance vs f32 reference.
    assert jnp.allclose(y, ref, atol=5e-2, rtol=5e-2)
    print("KERNEL_OK")
</pallas_src>

<mosaic_0001>
module attributes {stable_mosaic.version = 11 : i64} {
  func.func @_gemm_bias_lrelu_kernel(%arg0: i32, %arg1: memref<256x36xbf16, #tpu.memory_space<vmem>>, %arg2: memref<36x128xbf16, #tpu.memory_space<vmem>>, %arg3: memref<1x128xf32, #tpu.memory_space<vmem>>, %arg4: memref<256x128xf32, #tpu.memory_space<vmem>>) attributes {dimension_semantics = [#tpu.dimension_semantics<parallel>], iteration_bounds = array<i64: 2>, scalar_prefetch = 0 : i64, scratch_operands = 0 : i64, tpu.core_type = #tpu.core_type<tc>, window_params = [{transform_indices = @transform_0, window_bounds = array<i64: 256, 36>}, {pipeline_mode = #tpu.pipeline_mode<synchronous>, transform_indices = @transform_1, window_bounds = array<i64: 36, 128>}, {pipeline_mode = #tpu.pipeline_mode<synchronous>, transform_indices = @transform_2, window_bounds = array<i64: 1, 128>}, {transform_indices = @transform_3, window_bounds = array<i64: 256, 128>}]} {
    %c0 = arith.constant 0 : index
    %c0_0 = arith.constant 0 : index
    %0 = vector.load %arg1[%c0, %c0_0] : memref<256x36xbf16, #tpu.memory_space<vmem>>, vector<256x36xbf16>
    %c0_1 = arith.constant 0 : index
    %c0_2 = arith.constant 0 : index
    %1 = vector.load %arg2[%c0_1, %c0_2] : memref<36x128xbf16, #tpu.memory_space<vmem>>, vector<36x128xbf16>
    %cst = arith.constant dense<0.000000e+00> : vector<256x128xf32>
    %2 = tpu.matmul %0, %1, %cst {dimension_numbers = #tpu.dot_dimension_numbers<[1], [0], [0], [1], [0, 0, 1, 1], [], []>} : vector<256x36xbf16>, vector<36x128xbf16>, vector<256x128xf32> -> vector<256x128xf32>
    %c0_3 = arith.constant 0 : index
    %c0_4 = arith.constant 0 : index
    %3 = vector.load %arg3[%c0_3, %c0_4] : memref<1x128xf32, #tpu.memory_space<vmem>>, vector<1x128xf32>
    %4 = vector.broadcast %3 : vector<1x128xf32> to vector<256x128xf32>
    %5 = arith.addf %2, %4 : vector<256x128xf32>
    %cst_5 = arith.constant 2.000000e-01 : f32
    %6 = vector.broadcast %cst_5 : f32 to vector<256x128xf32>
    %7 = arith.mulf %6, %5 : vector<256x128xf32>
    %8 = arith.maximumf %5, %7 : vector<256x128xf32>
    %c0_6 = arith.constant 0 : index
    %c0_7 = arith.constant 0 : index
    %9 = vector.load %arg4[%c0_6, %c0_7] : memref<256x128xf32, #tpu.memory_space<vmem>>, vector<256x128xf32>
    tpu.vector_store %arg4[%c0_6, %c0_7], %8 {strides = array<i32>} : memref<256x128xf32, #tpu.memory_space<vmem>>, vector<256x128xf32>,
    return
  }
  func.func @transform_0(%arg0: i32) -> (i32, i32) {
    %c0_i32 = arith.constant 0 : i32
    %c0_i32_0 = arith.constant 0 : i32
    return %arg0, %c0_i32 : i32, i32
  }
  func.func @transform_1(%arg0: i32) -> (i32, i32) {
    %c0_i32 = arith.constant 0 : i32
    %c0_i32_0 = arith.constant 0 : i32
    %c0_i32_1 = arith.constant 0 : i32
    return %c0_i32, %c0_i32_0 : i32, i32
  }
  func.func @transform_2(%arg0: i32) -> (i32, i32) {
    %c0_i32 = arith.constant 0 : i32
    %c0_i32_0 = arith.constant 0 : i32
    %c0_i32_1 = arith.constant 0 : i32
    return %c0_i32, %c0_i32_0 : i32, i32
  }
  func.func @transform_3(%arg0: i32) -> (i32, i32) {
    %c0_i32 = arith.constant 0 : i32
    %c0_i32_0 = arith.constant 0 : i32
    return %arg0, %c0_i32 : i32, i32
  }
}

</mosaic_0001>

<bundles_post_ra>
// kernel: tpu_custom_call.1
= control target key start
LH: loop header
LB: loop body
LE: loop exit
PB: predicated region body
PF: predicated region fallthrough
CT: control target
= control target key end

     0   :  { %8 = vsyncpa [#allocation3], 0  ;;  %s1180_s0 = inlined_call_operand.vmem [shape: bf16[512,36], index: 0, kind: input, shape index: {}]   ;;  %s1181_s1 = inlined_call_operand.vmem [shape: bf16[36,128], index: 1, kind: input, shape index: {}]   ;;  %s1182_s2 = inlined_call_operand.vmem [shape: f32[1,128], index: 2, kind: input, shape index: {}]   ;;  %s1183_s3 = inlined_call_operand.hbm [shape: f32[512,128], index: 3, kind: output, shape index: {}]  }
   0x1   :  { %10 = vsyncpa [#allocation3 + $0x1], 0  ;;  %s959_s12 = smov 0   ;;  %s961_s13 = smov 0  }
   0x2   :  { %s963_s14 = smov 0   ;;  %s965_s15 = smov 0  }
   0x3 LB: > { %s980_s16 = sadd.s32 4294967295, %s934_s15   ;;  %s698_s17 = sadd.s32 4294967294, %s934_s15   ;;  %s934_s15 = sphi %s965_s15, %s1189_s15   ;;  %s930_s14 = sphi %s963_s14, %s1188_s14   ;;  %s926_s13 = sphi %s961_s13, %s1187_s13   ;;  %s922_s12 = sphi %s959_s12, %s1186_s12  }
   0x4   : > { %s984_s18 = sadd.s32 1, %s934_s15   ;;  %s91_s19 = sadd.s32 1, %s930_s14 }
   0x5   : > { %s88_s20 = ssub.s32 %s934_s15, %s984_s18  ;;  %p101_p0 = scmp.ne.s32.totalorder %s930_s14, %s926_s13 }
   0x6   : > { %p89_p1 = scmp.eq.s32.totalorder %s88_s20, 0  ;;  %p102_p2 = scmp.eq.s32.totalorder %s980_s16, 1 }
   0x7   : > { %p107_p3 = scmp.ne.s32.totalorder %s926_s13, %s922_s12  ;;  %p108_p4 = scmp.eq.s32.totalorder %s698_s17, 1 }
   0x8   : > { %s995_s21 = scalar_select %p89_p1, %s930_s14, %s91_s19  }
   0x9   : > { %p997_p5 = por %p102_p2, %p101_p0  ;;  %p1001_p6 = por %p108_p4, %p107_p3 }
   0xa   : > { %p701_p7 = scmp.ge.s32.totalorder %s934_s15, 1  ;;  %p141_p8 = scmp.lt.s32.totalorder %s934_s15, 3 }
   0xc   : > { %p142_p9 = pnand %p701_p7, %p141_p8 }
   0xd   : > { %v853_v0 = vld [vmem:[%s1181_s1] sm:$0xff] (!%p142_p9)   ;;  %v854_v1 = vld [vmem:[%s1181_s1 + $0x8] sm:$0xff] (!%p142_p9)   ;;  %s703_s28 = sshll.u32 (!%p142_p9), %s980_s16, 5  ;;  %v855_v2 = vld [vmem:[%s1181_s1 + $0x10] ss:$0 sps:$4 sm:$0x33] (!%p142_p9)  }
   0xe   : > { %145 = sbr.rel (%p142_p9) target bundleno = 287 (0x11f), region = 32  ;;  %766 = vmatprep.subr.bf16.mxu0 (!%p142_p9), %v853_v0  ;;  %804 = vmatprep.subr.bf16.mxu1 (!%p142_p9), %v853_v0  ;;  %p166_p10 = scmp.lt.s32.totalorder (!%p142_p9), %s703_s28, 63  ;;  %vm361_vm0 = vcmask (!%p142_p9), 1041408   ;;  %vm312_vm1 = vcmask (!%p142_p9), 293888   ;;  %v1058_v20 = vld [vmem:[%s1182_s2] ss:$0 sm:$0xff] (!%p142_p9) }
   0xf   : > { %767 = vmatpush3.bf16.msra.mxu0 (!%p142_p9), %v853_v0  ;;  %807 = vmatpush3.bf16.msra.mxu1 (!%p142_p9), %v853_v0  ;;  %v363_v3 = vsel (!%p142_p9), %vm361_vm0, %v855_v2, 0  ;;  %s162_s8 = sand.u32 (!%p142_p9), 1, %s926_s13   ;;  %s746_s19 = sshll.u32 (!%p142_p9), %s980_s16, 12 }
  0x10   : > { %768 = vmatprep.subr.bf16.mxu0 (!%p142_p9), %v854_v1  ;;  %805 = vmatprep.subr.bf16.mxu1 (!%p142_p9), %v854_v1  ;;  %s702_s11 = sshll.u32 (!%p142_p9), %s162_s8, 8  ;;  %s1127_s25 = scalar_lea.hbm (!%p142_p9), %s1183_s3, %s746_s19 }
  0x11   : > { %s1070_s17 = scalar_lea.vmem (!%p142_p9), [#allocation2], %s702_s11  ;;  %s1139_s26 = scalar_lea.sflag (!%p142_p9), [#allocation3], %s162_s8 }
  0x12   : > { %s636_s20 = sshll.u32 (!%p142_p9), %s1070_s17, 4  ;;  %s1129_s20 = int_to_ptr.vmem [resolvable:$true] %s636_s20 }
  0x13   : > { %769 = vmatpush3.bf16.msra.mxu0 (!%p142_p9), %v854_v1  ;;  %808 = vmatpush3.bf16.msra.mxu1 (!%p142_p9), %v854_v1  ;;  %s872_s27 = scalar_lea.vmem (!%p142_p9), %s1129_s20, 4096 }
  0x14   : > { %810 = vmatprep.subr.msk.bf16.mxu0 (!%p142_p9), %vm361_vm0, %v855_v2  ;;  %811 = vmatprep.subr.msk.bf16.mxu1 (!%p142_p9), %vm361_vm0, %v855_v2  ;;  %p873_p11 = scmp.ne.s32.totalorder (!%p142_p9), %s1129_s20, %s872_s27 }
  0x15   : > { %s1191_s28 = smov (!%p166_p10, %s703_s28), 63 }
  0x16   : > { %s704_s4 = sshll.u32 %s1191_s28, 2  ;;  %p874_p12 = pnand %p873_p11, %p997_p5 }
  0x17   : > { %s1020_s7 = scalar_lea.vmem %s1180_s0, %s704_s4  ;;  %771 = vmatpush3.bf16.msra.mxu0 %v363_v3  ;;  %809 = vmatpush3.bf16.msra.mxu1 %v363_v3  ;;  %s936_s28 = smov [#allocation2]  }
  0x18   : > { %v856_v4 = vld [vmem:[%s1020_s7] sm:$0xff]   ;;  %v858_v6 = vld [vmem:[%s1020_s7 + $0x8] sm:$0xff]   ;;  %v860_v8 = vld [vmem:[%s1020_s7 + $0x10] sm:$0xff]   ;;  %p875_p13 = pneg %p874_p12  ;;  %s876_s29 = sshll.u32 %s936_s28, 4  ;;  %s877_s29 = int_to_ptr.vmem [resolvable:$false] %s876_s29 }
  0x19   : > { %v857_v5 = vld [vmem:[%s1020_s7 + $0x40] sm:$0xff]   ;;  %772 = vmatprep.mubr.msk.bf16.mxu0 %vm312_vm1, %v856_v4  ;;  %v859_v7 = vld [vmem:[%s1020_s7 + $0x48] sm:$0xff]   ;;  %v861_v9 = vld [vmem:[%s1020_s7 + $0x50] sm:$0xff]   ;;  %s878_s30 = scalar_lea.vmem %s877_s29, 8192  ;;  %p879_p0 = scmp.lt.s32.totalorder %s1129_s20, %s877_s29 }
  0x1a   : > { %788 = vmatprep.mubr.msk.bf16.mxu1 %vm312_vm1, %v857_v5  ;;  %773 = vmatmul.mubr.msk.bf16.vlgmr.msra.gmra.mrb[0].mxu0 %vm312_vm1, %v858_v6  ;;  %v862_v10 = vld [vmem:[%s1020_s7 + $0x18] sm:$0xff]   ;;  %v864_v12 = vld [vmem:[%s1020_s7 + $0x20] sm:$0xff]   ;;  %v866_v14 = vld [vmem:[%s1020_s7 + $0x28] sm:$0xff]   ;;  %p880_p1 = scmp.lt.s32.totalorder %s878_s30, %s872_s27 }
  0x1b   : > { %789 = vmatmul.mubr.msk.bf16.vlgmr.msra.gmra.mrb[0].mxu1 %vm312_vm1, %v859_v7  ;;  %776 = vmatprep.mubr.msk.bf16.mxu0 %vm312_vm1, %v860_v8  ;;  %v863_v11 = vld [vmem:[%s1020_s7 + $0x58] sm:$0xff]   ;;  %v865_v13 = vld [vmem:[%s1020_s7 + $0x60] sm:$0xff]   ;;  %v867_v15 = vld [vmem:[%s1020_s7 + $0x68] sm:$0xff]  }
  0x1c   : > { %792 = vmatprep.mubr.msk.bf16.mxu1 %vm312_vm1, %v861_v9  ;;  %v868_v16 = vld [vmem:[%s1020_s7 + $0x30] sm:$0xff]   ;;  %v870_v18 = vld [vmem:[%s1020_s7 + $0x38] sm:$0xff]   ;;  %p881_p2 = por %p880_p1, %p879_p0 }
  0x1d   : > { %v869_v17 = vld [vmem:[%s1020_s7 + $0x70] sm:$0xff]   ;;  %v871_v19 = vld [vmem:[%s1020_s7 + $0x78] sm:$0xff]  }
  0x1e   : > { %p882_p3 = pnand %p881_p2, %p875_p13 }
  0x22   : > { %777 = vmatmul.mubr.msk.bf16.gmra.mrb[4].mxu0 %vm312_vm1, %v862_v10 }
  0x23   : > { %793 = vmatmul.mubr.msk.bf16.gmra.mrb[4].mxu1 %vm312_vm1, %v863_v11  ;;  %780 = vmatprep.mubr.msk.bf16.mxu0 %vm312_vm1, %v864_v12 }
  0x24   : > { %796 = vmatprep.mubr.msk.bf16.mxu1 %vm312_vm1, %v865_v13 }
  0x2a   : > { %781 = vmatmul.mubr.msk.bf16.gmra.mrb[8].mxu0 %vm312_vm1, %v866_v14 }
  0x2b   : > { %797 = vmatmul.mubr.msk.bf16.gmra.mrb[8].mxu1 %vm312_vm1, %v867_v15  ;;  %784 = vmatprep.mubr.msk.bf16.mxu0 %vm312_vm1, %v868_v16 }
  0x2c   : > { %800 = vmatprep.mubr.msk.bf16.mxu1 %vm312_vm1, %v869_v17 }
  0x32   : > { %785 = vmatmul.mubr.msk.bf16.gmra.mrb[12].mxu0 %vm312_vm1, %v870_v18 }
  0x33   : > { %801 = vmatmul.mubr.msk.bf16.gmra.mrb[12].mxu1 %vm312_vm1, %v871_v19 }
  0xed   : > { %v774_v21 = vpop.f32.mrb[0].mxu0 }
  0xee   : > { %v790_v22 = vpop.f32.mrb[0].mxu1  ;;  %v408_v23 = vadd.f32 %v774_v21, %v1058_v20  ;;  %v399_v25 = vpop.f32.mrb[1].mxu0 }
  0xef   : > { %v472_v24 = vadd.f32 %v790_v22, %v1058_v20  ;;  %v463_v26 = vpop.f32.mrb[1].mxu1  ;;  %v400_v27 = vadd.f32 %v1058_v20, %v399_v25  ;;  %v775_v29 = vpop.f32.mrb[2].mxu0 }
  0xf0   : > { %v464_v28 = vadd.f32 %v1058_v20, %v463_v26  ;;  %v791_v30 = vpop.f32.mrb[2].mxu1  ;;  %v528_v31 = vmul.f32 0.2, %v408_v23  ;;  %v411_v33 = vadd.f32 %v775_v29, %v1058_v20  ;;  %v402_v35 = vpop.f32.mrb[3].mxu0 }
  0xf1   : > { %v544_v32 = vmul.f32 0.2, %v472_v24  ;;  %v475_v34 = vadd.f32 %v791_v30, %v1058_v20  ;;  %v466_v36 = vpop.f32.mrb[3].mxu1  ;;  %v526_v37 = vmul.f32 0.2, %v400_v27  ;;  %v403_v39 = vadd.f32 %v1058_v20, %v402_v35 }
  0xf2   : > { %v542_v38 = vmul.f32 0.2, %v464_v28  ;;  %v467_v40 = vadd.f32 %v1058_v20, %v466_v36  ;;  %v560_v41 = vmax.f32 %v408_v23, %v528_v31  ;;  %v529_v43 = vmul.f32 0.2, %v411_v33 }
  0xf3   : > { %v576_v42 = vmax.f32 %v472_v24, %v544_v32  ;;  %v545_v44 = vmul.f32 0.2, %v475_v34  ;;  %v558_v45 = vmax.f32 %v400_v27, %v526_v37  ;;  %v527_v47 = vmul.f32 0.2, %v403_v39 }
  0xf4   : > { %v574_v46 = vmax.f32 %v464_v28, %v542_v38  ;;  %v543_v48 = vmul.f32 0.2, %v467_v40  ;;  %592 = vst [vmem:[%s1070_s17 + $0x10] sm:$0xff] %v560_v41  ;;  %v561_v49 = vmax.f32 %v411_v33, %v529_v43 }
  0xf5   : > { %608 = vst [vmem:[%s1070_s17 + $0x90] sm:$0xff] %v576_v42  ;;  %v577_v50 = vmax.f32 %v475_v34, %v545_v44  ;;  %590 = vst [vmem:[%s1070_s17] sm:$0xff] %v558_v45  ;;  %v559_v51 = vmax.f32 %v403_v39, %v527_v47  ;;  %v778_v53 = vpop.f32.mrb[4].mxu0 }
  0xf6   : > { %606 = vst [vmem:[%s1070_s17 + $0x80] sm:$0xff] %v574_v46  ;;  %v575_v52 = vmax.f32 %v467_v40, %v543_v48  ;;  %v794_v54 = vpop.f32.mrb[4].mxu1  ;;  %593 = vst [vmem:[%s1070_s17 + $0x18] sm:$0xff] %v561_v49  ;;  %v424_v55 = vadd.f32 %v778_v53, %v1058_v20  ;;  %v415_v57 = vpop.f32.mrb[5].mxu0 }
  0xf7   : > { %609 = vst [vmem:[%s1070_s17 + $0x98] sm:$0xff] %v577_v50  ;;  %v488_v56 = vadd.f32 %v794_v54, %v1058_v20  ;;  %v479_v58 = vpop.f32.mrb[5].mxu1  ;;  %591 = vst [vmem:[%s1070_s17 + $0x8] sm:$0xff] %v559_v51  ;;  %v416_v59 = vadd.f32 %v1058_v20, %v415_v57  ;;  %v779_v61 = vpop.f32.mrb[6].mxu0 }
  0xf8   : > { %607 = vst [vmem:[%s1070_s17 + $0x88] sm:$0xff] %v575_v52  ;;  %v480_v60 = vadd.f32 %v1058_v20, %v479_v58  ;;  %v795_v62 = vpop.f32.mrb[6].mxu1  ;;  %v532_v63 = vmul.f32 0.2, %v424_v55  ;;  %v427_v1 = vadd.f32 %v779_v61, %v1058_v20  ;;  %v418_v3 = vpop.f32.mrb[7].mxu0 }
  0xf9   : > { %v548_v0 = vmul.f32 0.2, %v488_v56  ;;  %v491_v2 = vadd.f32 %v795_v62, %v1058_v20  ;;  %v482_v4 = vpop.f32.mrb[7].mxu1  ;;  %v530_v5 = vmul.f32 0.2, %v416_v59  ;;  %v419_v7 = vadd.f32 %v1058_v20, %v418_v3 }
  0xfa   : > { %v546_v6 = vmul.f32 0.2, %v480_v60  ;;  %v483_v8 = vadd.f32 %v1058_v20, %v482_v4  ;;  %v564_v9 = vmax.f32 %v424_v55, %v532_v63  ;;  %v533_v11 = vmul.f32 0.2, %v427_v1 }
  0xfb   : > { %v580_v10 = vmax.f32 %v488_v56, %v548_v0  ;;  %v549_v12 = vmul.f32 0.2, %v491_v2  ;;  %v562_v13 = vmax.f32 %v416_v59, %v530_v5  ;;  %v531_v15 = vmul.f32 0.2, %v419_v7 }
  0xfc   : > { %v578_v14 = vmax.f32 %v480_v60, %v546_v6  ;;  %v547_v16 = vmul.f32 0.2, %v483_v8  ;;  %596 = vst [vmem:[%s1070_s17 + $0x30] sm:$0xff] %v564_v9  ;;  %v565_v17 = vmax.f32 %v427_v1, %v533_v11 }
  0xfd   : > { %612 = vst [vmem:[%s1070_s17 + $0xb0] sm:$0xff] %v580_v10  ;;  %v581_v18 = vmax.f32 %v491_v2, %v549_v12  ;;  %594 = vst [vmem:[%s1070_s17 + $0x20] sm:$0xff] %v562_v13  ;;  %v563_v19 = vmax.f32 %v419_v7, %v531_v15  ;;  %v782_v22 = vpop.f32.mrb[8].mxu0 }
  0xfe   : > { %610 = vst [vmem:[%s1070_s17 + $0xa0] sm:$0xff] %v578_v14  ;;  %v579_v21 = vmax.f32 %v483_v8, %v547_v16  ;;  %v798_v23 = vpop.f32.mrb[8].mxu1  ;;  %597 = vst [vmem:[%s1070_s17 + $0x38] sm:$0xff] %v565_v17  ;;  %v440_v24 = vadd.f32 %v782_v22, %v1058_v20  ;;  %v431_v26 = vpop.f32.mrb[9].mxu0 }
  0xff   : > { %613 = vst [vmem:[%s1070_s17 + $0xb8] sm:$0xff] %v581_v18  ;;  %v504_v25 = vadd.f32 %v798_v23, %v1058_v20  ;;  %v495_v27 = vpop.f32.mrb[9].mxu1  ;;  %595 = vst [vmem:[%s1070_s17 + $0x28] sm:$0xff] %v563_v19  ;;  %v432_v28 = vadd.f32 %v1058_v20, %v431_v26  ;;  %v783_v30 = vpop.f32.mrb[10].mxu0 }
 0x100   : > { %611 = vst [vmem:[%s1070_s17 + $0xa8] sm:$0xff] %v579_v21  ;;  %v496_v29 = vadd.f32 %v1058_v20, %v495_v27  ;;  %v799_v31 = vpop.f32.mrb[10].mxu1  ;;  %v536_v32 = vmul.f32 0.2, %v440_v24  ;;  %v443_v34 = vadd.f32 %v783_v30, %v1058_v20  ;;  %v434_v36 = vpop.f32.mrb[11].mxu0 }
 0x101   : > { %v552_v33 = vmul.f32 0.2, %v504_v25  ;;  %v507_v35 = vadd.f32 %v799_v31, %v1058_v20  ;;  %v498_v37 = vpop.f32.mrb[11].mxu1  ;;  %v534_v38 = vmul.f32 0.2, %v432_v28  ;;  %v435_v40 = vadd.f32 %v1058_v20, %v434_v36 }
 0x102   : > { %v550_v39 = vmul.f32 0.2, %v496_v29  ;;  %v499_v41 = vadd.f32 %v1058_v20, %v498_v37  ;;  %v568_v42 = vmax.f32 %v440_v24, %v536_v32  ;;  %v537_v44 = vmul.f32 0.2, %v443_v34 }
 0x103   : > { %v584_v43 = vmax.f32 %v504_v25, %v552_v33  ;;  %v553_v45 = vmul.f32 0.2, %v507_v35  ;;  %v566_v46 = vmax.f32 %v432_v28, %v534_v38  ;;  %v535_v48 = vmul.f32 0.2, %v435_v40 }
 0x104   : > { %v582_v47 = vmax.f32 %v496_v29, %v550_v39  ;;  %v551_v49 = vmul.f32 0.2, %v499_v41  ;;  %600 = vst [vmem:[%s1070_s17 + $0x50] sm:$0xff] %v568_v42  ;;  %v569_v50 = vmax.f32 %v443_v34, %v537_v44 }
 0x105   : > { %616 = vst [vmem:[%s1070_s17 + $0xd0] sm:$0xff] %v584_v43  ;;  %v585_v51 = vmax.f32 %v507_v35, %v553_v45  ;;  %598 = vst [vmem:[%s1070_s17 + $0x40] sm:$0xff] %v566_v46  ;;  %v567_v52 = vmax.f32 %v435_v40, %v535_v48  ;;  %v786_v54 = vpop.f32.mrb[12].mxu0 }
 0x106   : > { %614 = vst [vmem:[%s1070_s17 + $0xc0] sm:$0xff] %v582_v47  ;;  %v583_v53 = vmax.f32 %v499_v41, %v551_v49  ;;  %v802_v55 = vpop.f32.mrb[12].mxu1  ;;  %601 = vst [vmem:[%s1070_s17 + $0x58] sm:$0xff] %v569_v50  ;;  %v456_v56 = vadd.f32 %v786_v54, %v1058_v20  ;;  %v447_v58 = vpop.f32.mrb[13].mxu0 }
 0x107   : > { %617 = vst [vmem:[%s1070_s17 + $0xd8] sm:$0xff] %v585_v51  ;;  %v520_v57 = vadd.f32 %v802_v55, %v1058_v20  ;;  %v511_v59 = vpop.f32.mrb[13].mxu1  ;;  %599 = vst [vmem:[%s1070_s17 + $0x48] sm:$0xff] %v567_v52  ;;  %v448_v60 = vadd.f32 %v1058_v20, %v447_v58  ;;  %v787_v62 = vpop.f32.mrb[14].mxu0 }
 0x108   : > { %615 = vst [vmem:[%s1070_s17 + $0xc8] sm:$0xff] %v583_v53  ;;  %v512_v61 = vadd.f32 %v1058_v20, %v511_v59  ;;  %v803_v63 = vpop.f32.mrb[14].mxu1  ;;  %v540_v0 = vmul.f32 0.2, %v456_v56  ;;  %v459_v2 = vadd.f32 %v787_v62, %v1058_v20  ;;  %v450_v4 = vpop.f32.mrb[15].mxu0 }
 0x109   : > { %v556_v1 = vmul.f32 0.2, %v520_v57  ;;  %v523_v3 = vadd.f32 %v803_v63, %v1058_v20  ;;  %v514_v5 = vpop.f32.mrb[15].mxu1  ;;  %v538_v6 = vmul.f32 0.2, %v448_v60  ;;  %v451_v8 = vadd.f32 %v1058_v20, %v450_v4 }
 0x10a   : > { %v554_v7 = vmul.f32 0.2, %v512_v61  ;;  %v515_v9 = vadd.f32 %v1058_v20, %v514_v5  ;;  %v572_v10 = vmax.f32 %v456_v56, %v540_v0  ;;  %v541_v12 = vmul.f32 0.2, %v459_v2 }
 0x10b   : > { %v588_v11 = vmax.f32 %v520_v57, %v556_v1  ;;  %v557_v13 = vmul.f32 0.2, %v523_v3  ;;  %v570_v14 = vmax.f32 %v448_v60, %v538_v6  ;;  %v539_v16 = vmul.f32 0.2, %v451_v8 }
 0x10c   : > { %v586_v15 = vmax.f32 %v512_v61, %v554_v7  ;;  %v555_v17 = vmul.f32 0.2, %v515_v9  ;;  %604 = vst [vmem:[%s1070_s17 + $0x70] sm:$0xff] %v572_v10  ;;  %v573_v20 = vmax.f32 %v459_v2, %v541_v12 }
 0x10d   : > { %620 = vst [vmem:[%s1070_s17 + $0xf0] sm:$0xff] %v588_v11  ;;  %v589_v18 = vmax.f32 %v523_v3, %v557_v13  ;;  %602 = vst [vmem:[%s1070_s17 + $0x60] sm:$0xff] %v570_v14  ;;  %v571_v19 = vmax.f32 %v451_v8, %v539_v16 }
 0x10e   : > { %618 = vst [vmem:[%s1070_s17 + $0xe0] sm:$0xff] %v586_v15  ;;  %v587_v21 = vmax.f32 %v515_v9, %v555_v17  ;;  %605 = vst [vmem:[%s1070_s17 + $0x78] sm:$0xff] %v573_v20 }
 0x10f   : > { %621 = vst [vmem:[%s1070_s17 + $0xf8] sm:$0xff] %v589_v18  ;;  %603 = vst [vmem:[%s1070_s17 + $0x68] sm:$0xff] %v571_v19 }
 0x110   : > { %619 = vst [vmem:[%s1070_s17 + $0xe8] sm:$0xff] %v587_v21 }
 0x111   : > { %885 = shalt.err (!%p882_p3)
}
 0x112   : > { %s886_s4 = scalar_lea.hbm %s1127_s25, 4096  ;;  %s890_s7 = scalar_lea.hbm %s1183_s3, 8192 }
 0x113   : > { %p887_p4 = scmp.ne.s32.totalorder %s1127_s25, %s886_s4  ;;  %p891_p9 = scmp.lt.u32.totalorder %s1127_s25, %s1183_s3 }
 0x114   : > { %p892_p10 = scmp.lt.u32.totalorder %s890_s7, %s886_s4  ;;  %p894_p12 = scmp.lt.u32.totalorder %s886_s4, %s1127_s25 }
 0x115   : > { %p888_p7 = pnand %p887_p4, %p997_p5 }
 0x116   : > { %p893_p11 = por %p892_p10, %p891_p9 }
 0x117   : > { %p889_p8 = pneg %p888_p7 }
 0x118   : > { %p895_p13 = por %p894_p12, %p893_p11 }
 0x11a   : > { %p896_p0 = pnand %p895_p13, %p889_p8 }
 0x11c   : > { %899 = shalt.err (!%p896_p0)
}
 0x11d   : > { %s937_s10 = smov 128   ;;  %s938_s11 = smov 8  }
 0x11e   : > { %812 = dma.vmem_to_hbm [thread:$0]  (%p997_p5), %s1129_s20, 4096, %s1127_s25, %s1139_s26, %s937_s10, %s937_s10, %s938_s11  }
 0x11f PF: > { %p818_p1 = scmp.ge.s32.totalorder %s934_s15, 2  ;;  %s651_s17 = sand.u32 1, %s922_s12  }
 0x120   : > { %s652_s19 = scalar_lea.sflag [#allocation3], %s651_s17 }
 0x121   : > { %p815_p2 = pnand %p818_p1, %p1001_p6 }
 0x123   : > { %917 = dma.done.wait (!%p815_p2), %s652_s19, 4096  }
 0x124   : > { %919 = vsyncadd (!%p815_p2), %s652_s19, 4294963200  ;;  %p13_p3 = scmp.ge.s32.totalorder %s984_s18, 4   ;;  %s1186_s12 = smov %s926_s13 }
 0x125   : > { %s1187_s13 = smov %s930_s14  ;;  %s1188_s14 = smov %s995_s21 }
 0x126   : > { %s1189_s15 = smov %s984_s18  ;;  %15 = sbr.rel (!%p13_p3) target bundleno = 3 (0x3), region = 67 }
 0x12d   :  { %657 = vsyncpa [#allocation3], 1 }
 0x12e   :  { %659 = vsyncpa [#allocation3 + $0x1], 1 }

</bundles_post_ra>
